<compile_context>
chip_gen: v6e
topology: v6e:2x2x1
jax: 0.10.0
libtpu: 0.0.40
codegen_flags: <defaults>
</compile_context>

<pallas_src>
import functools

import jax
import jax.numpy as jnp
from jax.experimental import pallas as pl
from jax.experimental.pallas import tpu as pltpu


# ----------------------------- Pallas conv1d kernel -----------------------------

def _make_conv1d_kernel(K, pad, L_out, pack_taps):
    """Build a conv1d kernel body (stride-1 taps; padding done on-tile).

    x_ref: (1, C_in, L_in) float32 with L_in + 2*pad == L_out + K - 1
    w_ref: (C_out, K*C_in) bf16 if pack_taps else (K, C_out, C_in) bf16
    b_ref: (C_out, 1) float32
    o_ref: (1, C_out, L_out) float32
    """

    def kernel(x_ref, w_ref, b_ref, o_ref):
        # bf16 operands for the MXU; cast on-tile.
        x = x_ref[0].astype(jnp.bfloat16)                    # (C_in, L_in)
        if pad > 0:
            z = jnp.zeros((x.shape[0], pad), jnp.bfloat16)
            x = jnp.concatenate([z, x, z], axis=-1)          # in-kernel zero padding

        if pack_taps:
            # Pack the K taps into the contraction dim: one matmul with
            # contraction K*C_in instead of K matmuls with contraction C_in.
            slab = jnp.concatenate([x[:, k:k + L_out] for k in range(K)], axis=0)
            acc = jnp.dot(w_ref[...], slab, preferred_element_type=jnp.float32)
        else:
            w = w_ref[...]                                   # (K, C_out, C_in) bf16
            acc = jnp.zeros((w.shape[1], L_out), jnp.float32)
            for k in range(K):                               # K <= 7, fully unrolled
                acc = acc + jnp.dot(w[k], x[:, k:k + L_out],
                                    preferred_element_type=jnp.float32)

        o_ref[0] = acc + b_ref[...]                          # f32 accumulate + bias

    return kernel


def conv1d_pallas(x, w, b, *, stride=1, padding=0):
    """Conv1d with PyTorch semantics (NCL input, OIK weight, bias) via Pallas."""
    B, C_in, L = x.shape
    C_out, _, K = w.shape
    L_out = (L + 2 * padding - K) // stride + 1

    w_k = jnp.transpose(w, (2, 0, 1))                        # (K, C_out, C_in)

    if stride == 1:
        # Padding handled inside the kernel (no jnp.pad / extra HBM pass here).
        x_in = x
        w_stack = w_k
        Kp = K
        pad_in = padding
    elif stride == 2:
        # Rewrite as a stride-1 conv over even/odd phases with stacked weights
        # (pure layout glue done once per call); the kernel runs padding-free.
        x_pad = jnp.pad(x, ((0, 0), (0, 0), (padding, padding)))
        Kp = (K + 1) // 2
        need = L_out + Kp - 1
        extra = max(0, 2 * need - x_pad.shape[2])
        x_pad = jnp.pad(x_pad, ((0, 0), (0, 0), (0, extra)))
        x_even = x_pad[:, :, 0::2][:, :, :need]
        x_odd = x_pad[:, :, 1::2][:, :, :need]
        x_in = jnp.concatenate([x_even, x_odd], axis=1)      # (B, 2*C_in, need)
        w_even = w_k[0::2]                                   # (Kp, C_out, C_in)
        w_odd = w_k[1::2]
        if w_odd.shape[0] < Kp:
            w_odd = jnp.pad(w_odd, ((0, Kp - w_odd.shape[0]), (0, 0), (0, 0)))
        w_stack = jnp.concatenate([w_even, w_odd], axis=2)   # (Kp, C_out, 2*C_in)
        pad_in = 0
    else:
        raise NotImplementedError("only stride 1 and 2 are used by this model")

    Cin_p = w_stack.shape[2]
    L_in = x_in.shape[2]
    assert L_in + 2 * pad_in == L_out + Kp - 1

    # Tap packing when the packed contraction stays small (tiny C_in layers);
    # big layers keep per-tap matmuls (contraction already deep enough and the
    # im2col slab would cost extra VMEM copies).
    pack_taps = (Kp * Cin_p) <= 256
    if pack_taps:
        # [o, k*Cin + c] = w_stack[k, o, c]  (matches the slab built in-kernel)
        w_arg = jnp.transpose(w_stack, (1, 0, 2)).reshape(C_out, Kp * Cin_p)
        w_arg = w_arg.astype(jnp.bfloat16)                   # pre-cast once
        w_index_map = lambda i: (0, 0)
    else:
        w_arg = w_stack.astype(jnp.bfloat16)                 # pre-cast once
        w_index_map = lambda i: (0, 0, 0)

    bias = b.reshape(C_out, 1).astype(jnp.float32)
    kernel = _make_conv1d_kernel(Kp, pad_in, L_out, pack_taps)

    return pl.pallas_call(
        kernel,
        out_shape=jax.ShapeDtypeStruct((B, C_out, L_out), jnp.float32),
        grid=(B,),
        in_specs=[
            pl.BlockSpec((1, Cin_p, L_in), lambda i: (i, 0, 0)),
            pl.BlockSpec(w_arg.shape, w_index_map),          # constant -> VMEM-resident
            pl.BlockSpec((C_out, 1), lambda i: (0, 0)),      # constant -> VMEM-resident
        ],
        out_specs=pl.BlockSpec((1, C_out, L_out), lambda i: (i, 0, 0)),
        compiler_params=pltpu.CompilerParams(dimension_semantics=("parallel",)),
    )(x_in, w_arg, bias)


def double_conv_pallas(x, w, b, *, stride=1):
    """Forward of DoubleConv: a single Conv1d(k, padding=(k-1)//2, stride)."""
    K = w.shape[2]
    padding = (K - 1) // 2
    return conv1d_pallas(x, w, b, stride=stride, padding=padding)


# ----------------------------- pure-JAX reference -----------------------------

def conv1d_ref(x, w, b, *, stride, padding, quantize_bf16=False):
    """Reference Conv1d.  With quantize_bf16=True the operands are rounded to bf16
    (same quantization as the kernel) so the comparison isolates accumulation order."""
    if quantize_bf16:
        x = x.astype(jnp.bfloat16).astype(jnp.float32)
        w = w.astype(jnp.bfloat16).astype(jnp.float32)
    y = jax.lax.conv_general_dilated(
        x, w, window_strides=(stride,), padding=[(padding, padding)],
        dimension_numbers=("NCH", "OIH", "NCH"),
        precision=jax.lax.Precision.HIGHEST)
    return y + b[None, :, None]


# ----------------------------- main -----------------------------

if __name__ == "__main__":
    key = jax.random.PRNGKey(0)
    B, L = 2, 512          # L chosen so L_out is a lane-dense multiple of 128

    def make_conv_params(key, c_in, c_out, k):
        key, kw, kb = jax.random.split(key, 3)
        scale = 1.0 / float((c_in * k) ** 0.5)
        w = jax.random.normal(kw, (c_out, c_in, k), jnp.float32) * scale
        b = jax.random.normal(kb, (c_out,), jnp.float32) * scale
        return key, w, b

    # DoubleConv(4, 64)              -- defaults: kernel_size=7, stride=1 (U-Net `inc`)
    key, w1, b1 = make_conv_params(key, 4, 64, 7)
    # DoubleConv(64, 128, stride=2)  -- as used by the U-Net `down` blocks
    key, w2, b2 = make_conv_params(key, 64, 128, 7)

    key, kx = jax.random.split(key)
    x = jax.random.normal(kx, (B, 4, L), jnp.float32)

    fwd1 = jax.jit(functools.partial(double_conv_pallas, stride=1))
    fwd2 = jax.jit(functools.partial(double_conv_pallas, stride=2))

    y1 = jax.block_until_ready(fwd1(x, w1, b1))
    y2 = jax.block_until_ready(fwd2(y1, w2, b2))
    assert y1.shape == (B, 64, L), y1.shape
    assert y2.shape == (B, 128, L // 2), y2.shape

    # Tight check: reference with the same bf16 operand quantization -> only f32
    # accumulation order differs (~1e-5 level).
    r1_q = conv1d_ref(x, w1, b1, stride=1, padding=3, quantize_bf16=True)
    r2_q = conv1d_ref(y1, w2, b2, stride=2, padding=3, quantize_bf16=True)
    err1 = float(jnp.max(jnp.abs(y1 - r1_q)))
    err2 = float(jnp.max(jnp.abs(y2 - r2_q)))
    assert err1 < 1e-3, f"stride-1 mismatch vs bf16-quantized reference: {err1}"
    assert err2 < 1e-3, f"stride-2 mismatch vs bf16-quantized reference: {err2}"

    # Semantic check vs the full-f32 reference; 6e-2 bounds bf16 operand
    # quantization over a 28- / 448-term contraction at unit-scale activations.
    r1_f = conv1d_ref(x, w1, b1, stride=1, padding=3)
    r2_f = conv1d_ref(y1, w2, b2, stride=2, padding=3)
    assert float(jnp.max(jnp.abs(y1 - r1_f))) < 6e-2
    assert float(jnp.max(jnp.abs(y2 - r2_f))) < 6e-2

    print("KERNEL_OK")
</pallas_src>

<mosaic_0001>
module attributes {stable_mosaic.version = 11 : i64} {
  func.func @kernel(%arg0: i32, %arg1: memref<1x4x512xf32, #tpu.memory_space<vmem>>, %arg2: memref<64x28xbf16, #tpu.memory_space<vmem>>, %arg3: memref<64x1xf32, #tpu.memory_space<vmem>>, %arg4: memref<1x64x512xf32, #tpu.memory_space<vmem>>) attributes {dimension_semantics = [#tpu.dimension_semantics<parallel>], iteration_bounds = array<i64: 2>, scalar_prefetch = 0 : i64, scratch_operands = 0 : i64, tpu.core_type = #tpu.core_type<tc>, window_params = [{transform_indices = @transform_0, window_bounds = array<i64: 1, 4, 512>}, {pipeline_mode = #tpu.pipeline_mode<synchronous>, transform_indices = @transform_1, window_bounds = array<i64: 64, 28>}, {pipeline_mode = #tpu.pipeline_mode<synchronous>, transform_indices = @transform_2, window_bounds = array<i64: 64, 1>}, {transform_indices = @transform_3, window_bounds = array<i64: 1, 64, 512>}]} {
    %c0 = arith.constant 0 : index
    %c0_0 = arith.constant 0 : index
    %c0_1 = arith.constant 0 : index
    %0 = vector.load %arg1[%c0, %c0_0, %c0_1] : memref<1x4x512xf32, #tpu.memory_space<vmem>>, vector<1x4x512xf32>
    %1 = vector.shape_cast %0 : vector<1x4x512xf32> to vector<4x512xf32>
    %2 = arith.truncf %1 : vector<4x512xf32> to vector<4x512xbf16>
    %cst = arith.constant 0.000000e+00 : bf16
    %3 = vector.broadcast %cst : bf16 to vector<4x3xbf16>
    %4 = tpu.concatenate %3, %2, %3 in 1 : vector<4x3xbf16>, vector<4x512xbf16>, vector<4x3xbf16> -> vector<4x518xbf16>
    %5 = vector.extract_strided_slice %4 {offsets = [0, 0], sizes = [4, 512], strides = [1, 1]} : vector<4x518xbf16> to vector<4x512xbf16>
    %6 = vector.extract_strided_slice %4 {offsets = [0, 1], sizes = [4, 512], strides = [1, 1]} : vector<4x518xbf16> to vector<4x512xbf16>
    %7 = vector.extract_strided_slice %4 {offsets = [0, 2], sizes = [4, 512], strides = [1, 1]} : vector<4x518xbf16> to vector<4x512xbf16>
    %8 = vector.extract_strided_slice %4 {offsets = [0, 3], sizes = [4, 512], strides = [1, 1]} : vector<4x518xbf16> to vector<4x512xbf16>
    %9 = vector.extract_strided_slice %4 {offsets = [0, 4], sizes = [4, 512], strides = [1, 1]} : vector<4x518xbf16> to vector<4x512xbf16>
    %10 = vector.extract_strided_slice %4 {offsets = [0, 5], sizes = [4, 512], strides = [1, 1]} : vector<4x518xbf16> to vector<4x512xbf16>
    %11 = vector.extract_strided_slice %4 {offsets = [0, 6], sizes = [4, 512], strides = [1, 1]} : vector<4x518xbf16> to vector<4x512xbf16>
    %12 = tpu.concatenate %5, %6, %7, %8, %9, %10, %11 in 0 : vector<4x512xbf16>, vector<4x512xbf16>, vector<4x512xbf16>, vector<4x512xbf16>, vector<4x512xbf16>, vector<4x512xbf16>, vector<4x512xbf16> -> vector<28x512xbf16>
    %c0_2 = arith.constant 0 : index
    %c0_3 = arith.constant 0 : index
    %13 = vector.load %arg2[%c0_2, %c0_3] : memref<64x28xbf16, #tpu.memory_space<vmem>>, vector<64x28xbf16>
    %cst_4 = arith.constant dense<0.000000e+00> : vector<64x512xf32>
    %14 = tpu.matmul %13, %12, %cst_4 {dimension_numbers = #tpu.dot_dimension_numbers<[1], [0], [0], [1], [0, 0, 1, 1], [], []>} : vector<64x28xbf16>, vector<28x512xbf16>, vector<64x512xf32> -> vector<64x512xf32>
    %c0_5 = arith.constant 0 : index
    %c0_6 = arith.constant 0 : index
    %15 = vector.load %arg3[%c0_5, %c0_6] : memref<64x1xf32, #tpu.memory_space<vmem>>, vector<64x1xf32>
    %16 = vector.broadcast %15 : vector<64x1xf32> to vector<64x512xf32>
    %17 = arith.addf %14, %16 : vector<64x512xf32>
    %c0_7 = arith.constant 0 : index
    %c0_8 = arith.constant 0 : index
    %c0_9 = arith.constant 0 : index
    %18 = vector.load %arg4[%c0_7, %c0_8, %c0_9] : memref<1x64x512xf32, #tpu.memory_space<vmem>>, vector<1x64x512xf32>
    %19 = vector.shape_cast %18 : vector<1x64x512xf32> to vector<64x512xf32>
    %20 = vector.shape_cast %17 : vector<64x512xf32> to vector<1x64x512xf32>
    tpu.vector_store %arg4[%c0_7, %c0_8, %c0_9], %20 {strides = array<i32>} : memref<1x64x512xf32, #tpu.memory_space<vmem>>, vector<1x64x512xf32>,
    return
  }
  func.func @transform_0(%arg0: i32) -> (i32, i32, i32) {
    %c0_i32 = arith.constant 0 : i32
    %c0_i32_0 = arith.constant 0 : i32
    %c0_i32_1 = arith.constant 0 : i32
    return %arg0, %c0_i32, %c0_i32_0 : i32, i32, i32
  }
  func.func @transform_1(%arg0: i32) -> (i32, i32) {
    %c0_i32 = arith.constant 0 : i32
    %c0_i32_0 = arith.constant 0 : i32
    %c0_i32_1 = arith.constant 0 : i32
    return %c0_i32, %c0_i32_0 : i32, i32
  }
  func.func @transform_2(%arg0: i32) -> (i32, i32) {
    %c0_i32 = arith.constant 0 : i32
    %c0_i32_0 = arith.constant 0 : i32
    %c0_i32_1 = arith.constant 0 : i32
    return %c0_i32, %c0_i32_0 : i32, i32
  }
  func.func @transform_3(%arg0: i32) -> (i32, i32, i32) {
    %c0_i32 = arith.constant 0 : i32
    %c0_i32_0 = arith.constant 0 : i32
    %c0_i32_1 = arith.constant 0 : i32
    return %arg0, %c0_i32, %c0_i32_0 : i32, i32, i32
  }
}

</mosaic_0001>

<bundles_post_ra>
// kernel: double_conv_pallas.1
= control target key start
LH: loop header
LB: loop body
LE: loop exit
PB: predicated region body
PF: predicated region fallthrough
CT: control target
= control target key end

     0   :  { %8 = vsyncpa [#allocation3], 0  ;;  %s1171_s0 = inlined_call_operand.vmem [shape: f32[2,4,512], index: 0, kind: input, shape index: {}]   ;;  %s1172_s1 = inlined_call_operand.vmem [shape: bf16[64,28], index: 1, kind: input, shape index: {}]   ;;  %s1173_s2 = inlined_call_operand.vmem [shape: f32[64,1], index: 2, kind: input, shape index: {}]   ;;  %s1174_s3 = inlined_call_operand.hbm [shape: f32[2,64,512], index: 3, kind: output, shape index: {}]  }
   0x1   :  { %10 = vsyncpa [#allocation3 + $0x1], 0  ;;  %s894_s12 = smov 0   ;;  %s896_s13 = smov 0  }
   0x2   :  { %s898_s14 = smov 0   ;;  %s900_s15 = smov 0  }
   0x3 LB: > { %s915_s16 = sadd.s32 4294967295, %s861_s15   ;;  %s716_s17 = sadd.s32 4294967294, %s861_s15   ;;  %s861_s15 = sphi %s900_s15, %s1180_s15   ;;  %s857_s14 = sphi %s898_s14, %s1179_s14   ;;  %s853_s13 = sphi %s896_s13, %s1178_s13   ;;  %s849_s12 = sphi %s894_s12, %s1177_s12  }
   0x4   : > { %s919_s18 = sadd.s32 1, %s861_s15   ;;  %s91_s19 = sadd.s32 1, %s857_s14 }
   0x5   : > { %s88_s20 = ssub.s32 %s861_s15, %s919_s18  ;;  %p101_p0 = scmp.ne.s32.totalorder %s857_s14, %s853_s13 }
   0x6   : > { %p89_p1 = scmp.eq.s32.totalorder %s88_s20, 0  ;;  %p102_p2 = scmp.eq.s32.totalorder %s915_s16, 1 }
   0x7   : > { %p107_p3 = scmp.ne.s32.totalorder %s853_s13, %s849_s12  ;;  %p108_p4 = scmp.eq.s32.totalorder %s716_s17, 1 }
   0x8   : > { %s930_s21 = scalar_select %p89_p1, %s857_s14, %s91_s19  }
   0x9   : > { %p932_p5 = por %p102_p2, %p101_p0  ;;  %p936_p6 = por %p108_p4, %p107_p3 }
   0xa   : > { %p719_p7 = scmp.ge.s32.totalorder %s861_s15, 1  ;;  %p140_p8 = scmp.lt.s32.totalorder %s861_s15, 3 }
   0xc   : > { %p141_p9 = pnand %p719_p7, %p140_p8 }
   0xd   : > { %p164_p10 = scmp.lt.s32.totalorder (!%p141_p9), %s915_s16, 1  ;;  %s863_s29 = smov (!%p141_p9), 3  }
   0xe   : > { %144 = sbr.rel (%p141_p9) target bundleno = 561 (0x231), region = 32  ;;  %s864_s30 = smov (!%p141_p9), 124  }
   0xf   : > { %s865_s4 = smov (!%p141_p9), 122   ;;  %s866_s5 = smov (!%p141_p9), 123  }
  0x10   : > { %s867_s6 = smov (!%p141_p9), 126   ;;  %s868_s7 = smov (!%p141_p9), 127  }
  0x11   : > { %s870_s8 = smov (!%p141_p9), 125   ;;  %s743_s27 = sshll.u32 (!%p141_p9), %s915_s16, 12 }
  0x13   : > { %s165_s24 = scalar_select %p164_p10, %s915_s16, 1  ;;  %vm194_vm0 = vcmask 23552   ;;  %v869_v27 = vmov 0   ;;  %v373_v33 = vld [vmem:[%s1173_s2] sm:$0xff]  ;;  %v374_v34 = vld [vmem:[%s1173_s2 + $0x8] sm:$0xff]  ;;  %v375_v35 = vld [vmem:[%s1173_s2 + $0x10] sm:$0xff] }
  0x14   : > { %567 = vmatprep.mubr.bf16.mxu1 %v869_v27  ;;  %494 = vmatprep.mubr.bf16.mxu0 %v869_v27  ;;  %v376_v36 = vld [vmem:[%s1173_s2 + $0x18] sm:$0xff]  ;;  %v377_v37 = vld [vmem:[%s1173_s2 + $0x20] sm:$0xff]  ;;  %v378_v38 = vld [vmem:[%s1173_s2 + $0x28] sm:$0xff]  ;;  %vm291_vm1 = vcmask 1006592   ;;  %vm276_vm2 = vcmask 1014784   ;;  %vm306_vm3 = vcmask 998400  }
  0x15   : > { %s742_s25 = sshll.u32 %s165_s24, 4  ;;  %793 = vset.pattern.permute.xlu0 %v869_v27  ;;  %794 = vset.pattern.permute.xlu1 %v869_v27  ;;  %v379_v39 = vld [vmem:[%s1173_s2 + $0x30] sm:$0xff]  ;;  %v380_v40 = vld [vmem:[%s1173_s2 + $0x38] sm:$0xff]  ;;  %vm311_vm4 = vcmask 1041408   ;;  %vm323_vm5 = vcmask 1043456   ;;  %vm332_vm6 = vcmask 1045504  }
  0x16   : > { %s168_s28 = scalar_lea.vmem %s1171_s0, %s742_s25  ;;  %vm221_vm7 = vcmask 1039360   ;;  %vm241_vm8 = vcmask 1031168   ;;  %vm261_vm9 = vcmask 1022976   ;;  %vm441_vm10 = vcmask 228352   ;;  %s161_s24 = sand.u32 1, %s853_s13  }
  0x17   : > { %v171_v0 = vld [vmem:[%s168_s28 + $0x8] sm:$0xff]  ;;  %v170_v1 = vld [vmem:[%s168_s28] sm:$0xff]  ;;  %s720_s25 = sshll.u32 %s161_s24, 8  ;;  %s1131_s16 = scalar_lea.sflag [#allocation3], %s161_s24 }
  0x18   : > { %v180_v2 = vpack.c.bf16 %v171_v0, %v171_v0  ;;  %v175_v3 = vcombine.high %v171_v0, %v171_v0  ;;  %v178_v4 = vpack.c.bf16 %v170_v1, %v170_v1  ;;  %v174_v5 = vcombine.high %v170_v1, %v170_v1  ;;  %s1086_s26 = scalar_lea.vmem [#allocation2], %s720_s25 }
  0x19   : > { %s654_s28 = sshll.u32 %s1086_s26, 4  ;;  %s1125_s28 = int_to_ptr.vmem [resolvable:$true] %s654_s28 }
  0x1a   : > { %190 = vrot.lane.b32.xlu1 %v180_v2, %s863_s29  ;;  %186 = vrot.lane.b32.xlu0 %v178_v4, %s863_s29  ;;  %v181_v6 = vpack.c.bf16 %v175_v3, %v175_v3  ;;  %v179_v7 = vpack.c.bf16 %v174_v5, %v174_v5 }
  0x1e   : > { %192 = vrot.lane.b32.xlu1 %v181_v6, %s863_s29  ;;  %188 = vrot.lane.b32.xlu0 %v179_v7, %s863_s29 }
  0x8c   : > { %v191_v8 = vpop.permute.xlu1 %190  ;;  %v187_v9 = vpop.permute.xlu0 %186 }
  0x8d   : > { %v947_v10 = vsel %vm194_vm0, 0, %v187_v9 }
  0x8e   : > { %266 = vrot.lane.b32.xlu0 %v947_v10, %s864_s30  ;;  %v226_v17 = vrot.slane %v947_v10, 4  ;;  %v206_v18 = vrot.slane %v947_v10, 6  ;;  %v246_v32 = vrot.slane %v947_v10, 2 }
  0x90   : > { %v189_v11 = vpop.permute.xlu0 %188  ;;  %v193_v14 = vpop.permute.xlu1 %192 }
  0x91   : > { %v950_v12 = vsel %vm194_vm0, %v187_v9, %v189_v11  ;;  %v952_v13 = vsel %vm194_vm0, %v189_v11, %v191_v8  ;;  %v203_v15 = vsel %vm194_vm0, %v193_v14, 0  ;;  %v956_v16 = vsel %vm194_vm0, %v191_v8, %v193_v14 }
  0x92   : > { %270 = vrot.lane.b32.xlu0 %v952_v13, %s864_s30  ;;  %268 = vrot.lane.b32.xlu1 %v950_v12, %s864_s30  ;;  %v208_v19 = vrot.slane %v952_v13, 6  ;;  %v207_v20 = vrot.slane %v950_v12, 6  ;;  %v210_v21 = vrot.slane %v203_v15, 6  ;;  %v209_v22 = vrot.slane %v956_v16, 6 }
  0x93   : > { %v227_v23 = vrot.slane %v950_v12, 4  ;;  %v228_v24 = vrot.slane %v952_v13, 4  ;;  %v229_v25 = vrot.slane %v956_v16, 4  ;;  %v230_v26 = vrot.slane %v203_v15, 4 }
  0x94   : > { %v247_v28 = vrot.slane %v950_v12, 2  ;;  %v248_v29 = vrot.slane %v952_v13, 2  ;;  %v249_v30 = vrot.slane %v956_v16, 2  ;;  %v250_v31 = vrot.slane %v203_v15, 2 }
  0x96   : > { %274 = vrot.lane.b32.xlu0 %v203_v15, %s864_s30  ;;  %272 = vrot.lane.b32.xlu1 %v956_v16, %s864_s30 }
  0x9a   : > { %296 = vrot.lane.b32.xlu0 %v226_v17, %s865_s4  ;;  %281 = vrot.lane.b32.xlu1 %v206_v18, %s866_s5 }
  0x9e   : > { %231 = vrot.lane.b32.xlu0 %v226_v17, %s867_s6  ;;  %211 = vrot.lane.b32.xlu1 %v206_v18, %s868_s7 }
  0xa2   : > { %285 = vrot.lane.b32.xlu1 %v208_v19, %s866_s5  ;;  %283 = vrot.lane.b32.xlu0 %v207_v20, %s866_s5 }
  0xa6   : > { %289 = vrot.lane.b32.xlu1 %v210_v21, %s866_s5  ;;  %287 = vrot.lane.b32.xlu0 %v209_v22, %s866_s5  ;;  %s801_s5 = scalar_lea.vmem %s1125_s28, 4096 }
  0xa7   : > { %p802_p11 = scmp.ne.s32.totalorder %s1125_s28, %s801_s5 }
  0xa9   : > { %p803_p12 = pnand %p802_p11, %p932_p5 }
  0xaa   : > { %298 = vrot.lane.b32.xlu1 %v227_v23, %s865_s4  ;;  %300 = vrot.lane.b32.xlu0 %v228_v24, %s865_s4 }
  0xab   : > { %p804_p13 = pneg %p803_p12 }
  0xae   : > { %302 = vrot.lane.b32.xlu1 %v229_v25, %s865_s4  ;;  %304 = vrot.lane.b32.xlu0 %v230_v26, %s865_s4  ;;  %s1123_s4 = scalar_lea.hbm %s1174_s3, %s743_s27 }
  0xb2   : > { %213 = vrot.lane.b32.xlu1 %v207_v20, %s868_s7  ;;  %215 = vrot.lane.b32.xlu0 %v208_v19, %s868_s7 }
  0xb6   : > { %217 = vrot.lane.b32.xlu1 %v209_v22, %s868_s7  ;;  %219 = vrot.lane.b32.xlu0 %v210_v21, %s868_s7 }
  0xba   : > { %235 = vrot.lane.b32.xlu1 %v228_v24, %s867_s6  ;;  %233 = vrot.lane.b32.xlu0 %v227_v23, %s867_s6 }
  0xbe   : > { %239 = vrot.lane.b32.xlu1 %v230_v26, %s867_s6  ;;  %237 = vrot.lane.b32.xlu0 %v229_v25, %s867_s6  ;;  %s871_s6 = smov [#allocation2]  }
  0xbf   : > { %s805_s7 = sshll.u32 %s871_s6, 4  ;;  %s806_s7 = int_to_ptr.vmem [resolvable:$false] %s805_s7 }
  0xc0   : > { %p808_p0 = scmp.lt.s32.totalorder %s1125_s28, %s806_s7 }
  0xc2   : > { %253 = vrot.lane.b32.xlu1 %v247_v28, %s870_s8  ;;  %255 = vrot.lane.b32.xlu0 %v248_v29, %s870_s8 }
  0xc6   : > { %257 = vrot.lane.b32.xlu1 %v249_v30, %s870_s8  ;;  %259 = vrot.lane.b32.xlu0 %v250_v31, %s870_s8 }
  0xca   : > { %251 = vrot.lane.b32.xlu1 %v246_v32, %s870_s8  ;;  %383 = vperm.xlu0 %793, %v373_v33   ;;  %s807_s8 = scalar_lea.vmem %s806_s7, 8192 }
  0xcb   : > { %p809_p1 = scmp.lt.s32.totalorder %s807_s8, %s801_s5 }
  0xcd   : > { %p810_p2 = por %p809_p1, %p808_p0 }
  0xce   : > { %388 = vperm.xlu1 %794, %v374_v34   ;;  %398 = vperm.xlu0 %793, %v376_v36  }
  0xcf   : > { %p811_p3 = pnand %p810_p2, %p804_p13 }
  0xd2   : > { %393 = vperm.xlu1 %794, %v375_v35   ;;  %408 = vperm.xlu0 %793, %v378_v38  }
  0xd6   : > { %403 = vperm.xlu1 %794, %v377_v37   ;;  %418 = vperm.xlu0 %793, %v380_v40  }
  0xda   : > { %413 = vperm.xlu1 %794, %v379_v39  }
 0x100   : > { %v267_v41 = vpop.permute.xlu0 %266 }
 0x104   : > { %v269_v42 = vpop.permute.xlu1 %268  ;;  %v271_v43 = vpop.permute.xlu0 %270 }
 0x105   : > { %v277_v56 = vsel %vm276_vm2, %v267_v41, %v269_v42  ;;  %v278_v57 = vsel %vm276_vm2, %v269_v42, %v271_v43 }
 0x108   : > { %v273_v44 = vpop.permute.xlu1 %272  ;;  %v275_v45 = vpop.permute.xlu0 %274 }
 0x109   : > { %v279_v5 = vsel %vm276_vm2, %v271_v43, %v273_v44  ;;  %v280_v6 = vsel %vm276_vm2, %v273_v44, %v275_v45 }
 0x10c   : > { %v282_v46 = vpop.permute.xlu1 %281  ;;  %v297_v47 = vpop.permute.xlu0 %296 }
 0x110   : > { %v999_v48 = vpop.permute.xlu1 %211  ;;  %v1001_v49 = vpop.permute.xlu0 %231 }
 0x114   : > { %v286_v50 = vpop.permute.xlu1 %285  ;;  %v284_v51 = vpop.permute.xlu0 %283 }
 0x115   : > { %v292_v54 = vsel %vm291_vm1, %v282_v46, %v284_v51  ;;  %v293_v55 = vsel %vm291_vm1, %v284_v51, %v286_v50 }
 0x116   : > { %v350_v62 = vsel %vm311_vm4, %v278_v57, %v293_v55  ;;  %v347_v63 = vsel %vm311_vm4, %v277_v56, %v292_v54  ;;  %v799_v56 = vld [vmem:[%s1172_s1 + $0x10] sm:$0xff]   ;;  %v800_v57 = vld [vmem:[%s1172_s1 + $0x18] sm:$0xff]  }
 0x118   : > { %v290_v52 = vpop.permute.xlu1 %289  ;;  %v288_v53 = vpop.permute.xlu0 %287 }
 0x119   : > { %v294_v0 = vsel %vm291_vm1, %v286_v50, %v288_v53  ;;  %v295_v1 = vsel %vm291_vm1, %v288_v53, %v290_v52 }
 0x11a   : > { %v356_v14 = vsel %vm311_vm4, %v280_v6, %v295_v1  ;;  %v353_v15 = vsel %vm311_vm4, %v279_v5, %v294_v0 }
 0x11c   : > { %v299_v58 = vpop.permute.xlu1 %298  ;;  %v301_v59 = vpop.permute.xlu0 %300 }
 0x11d   : > { %v307_v60 = vsel %vm306_vm3, %v297_v47, %v299_v58  ;;  %v308_v61 = vsel %vm306_vm3, %v299_v58, %v301_v59 }
 0x11e   : > { %v360_v2 = vsel %vm323_vm5, %v350_v62, %v308_v61  ;;  %v358_v3 = vsel %vm323_vm5, %v347_v63, %v307_v60 }
 0x11f   : > { %727 = vmatprep.subr.msk.bf16.mxu0 %vm332_vm6, %v360_v2  ;;  %v454_v4 = vsel %vm332_vm6, %v358_v3, 0 }
 0x120   : > { %v303_v7 = vpop.permute.xlu1 %302  ;;  %475 = vmatpush1.bf16.msra.mxu0 %v454_v4  ;;  %v305_v8 = vpop.permute.xlu0 %304 }
 0x121   : > { %v309_v9 = vsel %vm306_vm3, %v301_v59, %v303_v7  ;;  %v310_v11 = vsel %vm306_vm3, %v303_v7, %v305_v8 }
 0x122   : > { %v364_v17 = vsel %vm323_vm5, %v356_v14, %v310_v11  ;;  %v362_v18 = vsel %vm323_vm5, %v353_v15, %v309_v9 }
 0x123   : > { %732 = vmatprep.subr.msk.bf16.mxu1 %vm332_vm6, %v364_v17  ;;  %v458_v19 = vsel %vm332_vm6, %v362_v18, 0 }
 0x124   : > { %v214_v20 = vpop.permute.xlu1 %213  ;;  %548 = vmatpush1.bf16.msra.mxu1 %v458_v19  ;;  %v216_v21 = vpop.permute.xlu0 %215 }
 0x125   : > { %v223_v29 = vsel %vm221_vm7, %v214_v20, %v216_v21 }
 0x126   : > { %v316_v31 = vsel %vm311_vm4, %v950_v12, %v223_v29  ;;  %v222_v12 = vsel %vm221_vm7, %v999_v48, %v214_v20 }
 0x127   : > { %v313_v52 = vsel %vm311_vm4, %v947_v10, %v222_v12  ;;  %v798_v10 = vld [vmem:[%s1172_s1 + $0x8] sm:$0xff]  }
 0x128   : > { %v218_v22 = vpop.permute.xlu1 %217  ;;  %v220_v23 = vpop.permute.xlu0 %219 }
 0x129   : > { %v224_v34 = vsel %vm221_vm7, %v216_v21, %v218_v22  ;;  %v225_v35 = vsel %vm221_vm7, %v218_v22, %v220_v23 }
 0x12a   : > { %v319_v41 = vsel %vm311_vm4, %v952_v13, %v224_v34  ;;  %v322_v42 = vsel %vm311_vm4, %v956_v16, %v225_v35  ;;  %v797_v16 = vld [vmem:[%s1172_s1] sm:$0xff]  }
 0x12c   : > { %v236_v24 = vpop.permute.xlu1 %235  ;;  %v234_v25 = vpop.permute.xlu0 %233 }
 0x12d   : > { %v243_v30 = vsel %vm241_vm8, %v234_v25, %v236_v24  ;;  %v242_v51 = vsel %vm241_vm8, %v1001_v49, %v234_v25 }
 0x12e   : > { %v327_v37 = vsel %vm323_vm5, %v316_v31, %v243_v30  ;;  %v325_v55 = vsel %vm323_vm5, %v313_v52, %v242_v51 }
 0x130   : > { %v240_v26 = vpop.permute.xlu1 %239  ;;  %v238_v28 = vpop.permute.xlu0 %237 }
 0x131   : > { %v244_v38 = vsel %vm241_vm8, %v236_v24, %v238_v28  ;;  %v245_v39 = vsel %vm241_vm8, %v238_v28, %v240_v26 }
 0x132   : > { %v331_v47 = vsel %vm323_vm5, %v322_v42, %v245_v39  ;;  %v329_v50 = vsel %vm323_vm5, %v319_v41, %v244_v38 }
 0x134   : > { %v254_v32 = vpop.permute.xlu1 %253  ;;  %v256_v33 = vpop.permute.xlu0 %255 }
 0x135   : > { %v263_v36 = vsel %vm261_vm9, %v254_v32, %v256_v33 }
 0x136   : > { %v337_v40 = vsel %vm332_vm6, %v327_v37, %v263_v36 }
 0x137   : > { %476 = vmatprep.subr.bf16.mxu0 %v337_v40 }
 0x138   : > { %v258_v43 = vpop.permute.xlu1 %257  ;;  %v260_v44 = vpop.permute.xlu0 %259 }
 0x139   : > { %v264_v45 = vsel %vm261_vm9, %v256_v33, %v258_v43  ;;  %v265_v46 = vsel %vm261_vm9, %v258_v43, %v260_v44 }
 0x13a   : > { %v343_v48 = vsel %vm332_vm6, %v331_v47, %v265_v46  ;;  %v340_v13 = vsel %vm332_vm6, %v329_v50, %v264_v45 }
 0x13b   : > { %549 = vmatprep.subr.bf16.mxu1 %v343_v48 }
 0x13c   : > { %v252_v53 = vpop.permute.xlu1 %251  ;;  %550 = vmatpush1.bf16.msra.mxu1 %v340_v13 }
 0x13d   : > { %v262_v54 = vsel %vm261_vm9, %v252_v53, %v254_v32 }
 0x13e   : > { %v334_v49 = vsel %vm332_vm6, %v325_v55, %v262_v54 }
 0x13f   : > { %477 = vmatpush1.bf16.msra.mxu0 %v334_v49  ;;  %733 = vmatmul.mubr.msk.bf16.vlgmr.msra.gmra.mxu1 %vm441_vm10, %v797_v16 }
 0x140   : > { %577 = vmatprep.mubr.bf16.mxu1 %v869_v27 }
 0x142   : > { %728 = vmatmul.mubr.msk.bf16.vlgmr.msra.gmra.mxu0 %vm441_vm10, %v797_v16 }
 0x143   : > { %504 = vmatprep.mubr.bf16.mxu0 %v869_v27 }
 0x145   : > { %v384_v58 = vpop.permute.xlu0 %383 }
 0x147   : > { %734 = vmatmul.mubr.msk.bf16.gmra.mxu1 %vm441_vm10, %v798_v10 }
 0x148   : > { %587 = vmatprep.mubr.bf16.mxu1 %v869_v27 }
 0x149   : > { %v389_v62 = vpop.permute.xlu1 %388  ;;  %v399_v19 = vpop.permute.xlu0 %398 }
 0x14a   : > { %729 = vmatmul.mubr.msk.bf16.gmra.mxu0 %vm441_vm10, %v798_v10 }
 0x14b   : > { %514 = vmatprep.mubr.bf16.mxu0 %v869_v27 }
 0x14d   : > { %v394_v6 = vpop.permute.xlu1 %393  ;;  %v409_v40 = vpop.permute.xlu0 %408 }
 0x14f   : > { %735 = vmatmul.mubr.msk.bf16.gmra.mxu1 %vm441_vm10, %v799_v56 }
 0x150   : > { %597 = vmatprep.mubr.bf16.mxu1 %v869_v27 }
 0x151   : > { %v404_v33 = vpop.permute.xlu1 %403  ;;  %v419_v49 = vpop.permute.xlu0 %418 }
 0x152   : > { %730 = vmatmul.mubr.msk.bf16.gmra.mxu0 %vm441_vm10, %v799_v56 }
 0x153   : > { %524 = vmatprep.mubr.bf16.mxu0 %v869_v27 }
 0x155   : > { %v414_v50 = vpop.permute.xlu1 %413 }
 0x157   : > { %736 = vmatmul.mubr.msk.bf16.gmra.mxu1 %vm441_vm10, %v800_v57 }
 0x15a   : > { %731 = vmatmul.mubr.msk.bf16.gmra.mxu0 %vm441_vm10, %v800_v57 }
 0x1ff   : > { %v569_v59 = vpop.f32.mrf.mxu1 }
 0x200   : > { %v570_v60 = vadd.f32 %v569_v59, %v384_v58 }
 0x201   : > { %v571_v61 = vpop.f32.mrf.mxu1 }
 0x202   : > { %v496_v63 = vpop.f32.mrf.mxu0  ;;  %v572_v0 = vadd.f32 %v571_v61, %v384_v58  ;;  %610 = vst [vmem:[%s1086_s26 + $0x10] sm:$0xff] %v570_v60 }
 0x203   : > { %v497_v27 = vadd.f32 %v496_v63, %v384_v58  ;;  %v573_v1 = vpop.f32.mrf.mxu1 }
 0x204   : > { %611 = vst [vmem:[%s1086_s26 + $0x18] sm:$0xff] %v572_v0  ;;  %v574_v2 = vadd.f32 %v573_v1, %v389_v62  ;;  %v498_v3 = vpop.f32.mrf.mxu0 }
 0x205   : > { %608 = vst [vmem:[%s1086_s26] sm:$0xff] %v497_v27  ;;  %v499_v4 = vadd.f32 %v498_v3, %v384_v58  ;;  %v575_v5 = vpop.f32.mrf.mxu1 }
 0x206   : > { %614 = vst [vmem:[%s1086_s26 + $0x30] sm:$0xff] %v574_v2  ;;  %v576_v7 = vadd.f32 %v575_v5, %v389_v62  ;;  %v500_v8 = vpop.f32.mrf.mxu0 }
 0x207   : > { %609 = vst [vmem:[%s1086_s26 + $0x8] sm:$0xff] %v499_v4  ;;  %v501_v9 = vadd.f32 %v500_v8, %v389_v62  ;;  %v579_v11 = vpop.f32.mrf.mxu1 }
 0x208   : > { %615 = vst [vmem:[%s1086_s26 + $0x38] sm:$0xff] %v576_v7  ;;  %v502_v14 = vpop.f32.mrf.mxu0  ;;  %v580_v15 = vadd.f32 %v579_v11, %v394_v6 }
 0x209   : > { %612 = vst [vmem:[%s1086_s26 + $0x20] sm:$0xff] %v501_v9  ;;  %v503_v17 = vadd.f32 %v502_v14, %v389_v62  ;;  %v581_v18 = vpop.f32.mrf.mxu1 }
 0x20a   : > { %v582_v20 = vadd.f32 %v581_v18, %v394_v6  ;;  %618 = vst [vmem:[%s1086_s26 + $0x50] sm:$0xff] %v580_v15  ;;  %v506_v21 = vpop.f32.mrf.mxu0 }
 0x20b   : > { %613 = vst [vmem:[%s1086_s26 + $0x28] sm:$0xff] %v503_v17  ;;  %v507_v22 = vadd.f32 %v506_v21, %v394_v6  ;;  %v583_v23 = vpop.f32.mrf.mxu1 }
 0x20c   : > { %619 = vst [vmem:[%s1086_s26 + $0x58] sm:$0xff] %v582_v20  ;;  %v584_v24 = vadd.f32 %v583_v23, %v399_v19  ;;  %v508_v25 = vpop.f32.mrf.mxu0 }
 0x20d   : > { %616 = vst [vmem:[%s1086_s26 + $0x40] sm:$0xff] %v507_v22  ;;  %v509_v26 = vadd.f32 %v508_v25, %v394_v6  ;;  %v585_v28 = vpop.f32.mrf.mxu1 }
 0x20e   : > { %622 = vst [vmem:[%s1086_s26 + $0x70] sm:$0xff] %v584_v24  ;;  %v586_v29 = vadd.f32 %v585_v28, %v399_v19  ;;  %v510_v30 = vpop.f32.mrf.mxu0 }
 0x20f   : > { %617 = vst [vmem:[%s1086_s26 + $0x48] sm:$0xff] %v509_v26  ;;  %v511_v31 = vadd.f32 %v510_v30, %v399_v19  ;;  %v589_v32 = vpop.f32.mrf.mxu1 }
 0x210   : > { %623 = vst [vmem:[%s1086_s26 + $0x78] sm:$0xff] %v586_v29  ;;  %v590_v34 = vadd.f32 %v589_v32, %v404_v33  ;;  %v512_v35 = vpop.f32.mrf.mxu0 }
 0x211   : > { %620 = vst [vmem:[%s1086_s26 + $0x60] sm:$0xff] %v511_v31  ;;  %v513_v36 = vadd.f32 %v512_v35, %v399_v19  ;;  %v591_v37 = vpop.f32.mrf.mxu1 }
 0x212   : > { %626 = vst [vmem:[%s1086_s26 + $0x90] sm:$0xff] %v590_v34  ;;  %v592_v38 = vadd.f32 %v591_v37, %v404_v33  ;;  %v516_v39 = vpop.f32.mrf.mxu0 }
 0x213   : > { %621 = vst [vmem:[%s1086_s26 + $0x68] sm:$0xff] %v513_v36  ;;  %v517_v12 = vadd.f32 %v516_v39, %v404_v33  ;;  %v593_v41 = vpop.f32.mrf.mxu1 }
 0x214   : > { %627 = vst [vmem:[%s1086_s26 + $0x98] sm:$0xff] %v592_v38  ;;  %v594_v42 = vadd.f32 %v593_v41, %v409_v40  ;;  %v518_v43 = vpop.f32.mrf.mxu0 }
 0x215   : > { %624 = vst [vmem:[%s1086_s26 + $0x80] sm:$0xff] %v517_v12  ;;  %v519_v44 = vadd.f32 %v518_v43, %v404_v33  ;;  %v595_v45 = vpop.f32.mrf.mxu1 }
 0x216   : > { %630 = vst [vmem:[%s1086_s26 + $0xb0] sm:$0xff] %v594_v42  ;;  %v596_v46 = vadd.f32 %v595_v45, %v409_v40  ;;  %v520_v47 = vpop.f32.mrf.mxu0 }
 0x217   : > { %625 = vst [vmem:[%s1086_s26 + $0x88] sm:$0xff] %v519_v44  ;;  %v521_v51 = vadd.f32 %v520_v47, %v409_v40  ;;  %v599_v48 = vpop.f32.mrf.mxu1 }
 0x218   : > { %631 = vst [vmem:[%s1086_s26 + $0xb8] sm:$0xff] %v596_v46  ;;  %v600_v13 = vadd.f32 %v599_v48, %v414_v50  ;;  %v522_v16 = vpop.f32.mrf.mxu0 }
 0x219   : > { %628 = vst [vmem:[%s1086_s26 + $0xa0] sm:$0xff] %v521_v51  ;;  %v523_v52 = vadd.f32 %v522_v16, %v409_v40  ;;  %v601_v53 = vpop.f32.mrf.mxu1 }
 0x21a   : > { %634 = vst [vmem:[%s1086_s26 + $0xd0] sm:$0xff] %v600_v13  ;;  %v602_v54 = vadd.f32 %v601_v53, %v414_v50  ;;  %v526_v55 = vpop.f32.mrf.mxu0 }
 0x21b   : > { %629 = vst [vmem:[%s1086_s26 + $0xa8] sm:$0xff] %v523_v52  ;;  %v527_v10 = vadd.f32 %v526_v55, %v414_v50  ;;  %v603_v56 = vpop.f32.mrf.mxu1 }
 0x21c   : > { %635 = vst [vmem:[%s1086_s26 + $0xd8] sm:$0xff] %v602_v54  ;;  %v604_v57 = vadd.f32 %v603_v56, %v419_v49  ;;  %v528_v58 = vpop.f32.mrf.mxu0 }
 0x21d   : > { %632 = vst [vmem:[%s1086_s26 + $0xc0] sm:$0xff] %v527_v10  ;;  %v529_v59 = vadd.f32 %v528_v58, %v414_v50  ;;  %v605_v60 = vpop.f32.mrf.mxu1 }
 0x21e   : > { %638 = vst [vmem:[%s1086_s26 + $0xf0] sm:$0xff] %v604_v57  ;;  %v606_v61 = vadd.f32 %v605_v60, %v419_v49  ;;  %v530_v62 = vpop.f32.mrf.mxu0 }
 0x21f   : > { %633 = vst [vmem:[%s1086_s26 + $0xc8] sm:$0xff] %v529_v59  ;;  %v531_v63 = vadd.f32 %v530_v62, %v419_v49 }
 0x220   : > { %639 = vst [vmem:[%s1086_s26 + $0xf8] sm:$0xff] %v606_v61  ;;  %v532_v0 = vpop.f32.mrf.mxu0 }
 0x221   : > { %636 = vst [vmem:[%s1086_s26 + $0xe0] sm:$0xff] %v531_v63  ;;  %v533_v27 = vadd.f32 %v532_v0, %v419_v49 }
 0x223   : > { %637 = vst [vmem:[%s1086_s26 + $0xe8] sm:$0xff] %v533_v27 }
 0x224   : > { %814 = shalt.err (!%p811_p3)
}
 0x225   : > { %s815_s9 = scalar_lea.hbm %s1123_s4, 4096  ;;  %s819_s17 = scalar_lea.hbm %s1174_s3, 8192 }
 0x226   : > { %p816_p4 = scmp.ne.s32.totalorder %s1123_s4, %s815_s9  ;;  %p820_p9 = scmp.lt.s32.totalorder %s1123_s4, %s1174_s3 }
 0x227   : > { %p821_p10 = scmp.lt.s32.totalorder %s819_s17, %s815_s9 }
 0x228   : > { %p817_p7 = pnand %p816_p4, %p932_p5 }
 0x229   : > { %p822_p11 = por %p821_p10, %p820_p9 }
 0x22a   : > { %p818_p8 = pneg %p817_p7 }
 0x22c   : > { %p823_p12 = pnand %p822_p11, %p818_p8 }
 0x22e   : > { %826 = shalt.err (!%p823_p12)
}
 0x22f   : > { %s872_s24 = smov 512   ;;  %s873_s25 = smov 32  }
 0x230   : > { %744 = dma.vmem_to_hbm [thread:$0]  (%p932_p5), %s1125_s28, 4096, %s1123_s4, %s1131_s16, %s872_s24, %s872_s24, %s873_s25  }
 0x231 PF: > { %p750_p13 = scmp.ge.s32.totalorder %s861_s15, 2  ;;  %s669_s26 = sand.u32 1, %s849_s12  }
 0x232   : > { %s670_s27 = scalar_lea.sflag [#allocation3], %s669_s26 }
 0x233   : > { %p747_p0 = pnand %p750_p13, %p936_p6 }
 0x235   : > { %p748_p1 = pneg %p747_p0 }
 0x237   : > { %844 = dma.done.wait (%p748_p1), %s670_s27, 4096  }
 0x238   : > { %846 = vsyncadd (%p748_p1), %s670_s27, 4294963200  ;;  %p13_p2 = scmp.ge.s32.totalorder %s919_s18, 4   ;;  %s1177_s12 = smov %s853_s13 }
 0x239   : > { %s1178_s13 = smov %s857_s14  ;;  %s1179_s14 = smov %s930_s21 }
 0x23a   : > { %s1180_s15 = smov %s919_s18  ;;  %15 = sbr.rel (!%p13_p2) target bundleno = 3 (0x3), region = 67 }
 0x23f   :  { %675 = vsyncpa [#allocation3], 1 }
 0x240   :  { %677 = vsyncpa [#allocation3 + $0x1], 1 }

</bundles_post_ra>
